<compile_context>
chip_gen: v7x
topology: tpu7x:2x2x1
jax: 0.10.0
libtpu: 0.0.40
codegen_flags: <defaults>
</compile_context>

<pallas_src>
import math
import functools

import jax
import jax.numpy as jnp
from jax.experimental import pallas as pl
from jax.experimental.pallas import tpu as pltpu


def _round_up(x, m):
    return (x + m - 1) // m * m


# ----------------------------------------------------------------------------
# Fused kernel: hi accumulation + blend + weight matmul(s) (+ optional residual)
# ----------------------------------------------------------------------------
def _gcn_fused_kernel(*refs, alpha, theta, residual, variant):
    if variant:
        if residual:
            adj_ref, x_ref, h0_ref, w1_ref, w2_ref, xres_ref, out_ref, acc_ref = refs
        else:
            adj_ref, x_ref, h0_ref, w1_ref, w2_ref, out_ref, acc_ref = refs
            xres_ref = None
    else:
        if residual:
            adj_ref, x_ref, h0_ref, w_ref, xres_ref, out_ref, acc_ref = refs
        else:
            adj_ref, x_ref, h0_ref, w_ref, out_ref, acc_ref = refs
            xres_ref = None

    k = pl.program_id(1)

    @pl.when(k == 0)
    def _():
        acc_ref[...] = jnp.zeros_like(acc_ref)

    # Inner loop: pure MXU accumulate of adj @ x into the f32 scratch.
    acc_ref[...] += jnp.dot(
        adj_ref[...], x_ref[...], preferred_element_type=jnp.float32
    )

    # Epilogue: blend + weight matmul, only once per row-tile.
    @pl.when(k == pl.num_programs(1) - 1)
    def _():
        hi = acc_ref[...]
        h0 = h0_ref[...].astype(jnp.float32)
        r = (1.0 - alpha) * hi + alpha * h0
        if variant:
            # cat([hi, h0], 1) @ W  ==  hi @ W[:F]  +  h0 @ W[F:]
            sw = jnp.dot(
                hi.astype(w1_ref.dtype), w1_ref[...],
                preferred_element_type=jnp.float32,
            ) + jnp.dot(
                h0.astype(w2_ref.dtype), w2_ref[...],
                preferred_element_type=jnp.float32,
            )
        else:
            # support == r
            sw = jnp.dot(
                r.astype(w_ref.dtype), w_ref[...],
                preferred_element_type=jnp.float32,
            )
        out = theta * sw + (1.0 - theta) * r
        if residual:
            out = out + xres_ref[...].astype(jnp.float32)
        out_ref[...] = out.astype(out_ref.dtype)


def gcn_forward(x, adj, h0, weight, *, alpha, theta, residual, variant):
    """Fused GCNII layer forward.
    x/h0: (N, F), adj: (N, N), weight: (F, F) or (2F, F) when variant."""
    n, f = x.shape
    f_out = weight.shape[1]
    assert adj.shape == (n, n), "adj must be (N, N)"
    assert h0.shape == (n, f), "h0 must match input shape"
    expected_w_rows = 2 * f if variant else f
    assert weight.shape[0] == expected_w_rows, "weight rows mismatch"
    # The theta-blend adds (support @ W) to r (which has F columns), so F_out == F.
    assert f_out == f, "GraphConvolution requires out_features == in_features"

    # Lane-dense zero padding (exact: padded adj rows/cols and padded feature
    # columns of x/h0/W are zero, so padded outputs stay zero / are sliced off).
    n_pad = _round_up(n, 128)
    f_pad = _round_up(f, 128)
    dt = x.dtype

    def pad2(a, rows, cols):
        a = a.astype(dt)
        if a.shape == (rows, cols):
            return a
        return jnp.zeros((rows, cols), dt).at[: a.shape[0], : a.shape[1]].set(a)

    adj_p = pad2(adj, n_pad, n_pad)
    x_p = pad2(x, n_pad, f_pad)
    h0_p = pad2(h0, n_pad, f_pad)
    if variant:
        w_ops = [pad2(weight[:f], f_pad, f_pad), pad2(weight[f:], f_pad, f_pad)]
    else:
        w_ops = [pad2(weight, f_pad, f_pad)]

    # Tile-size selection: biggest candidate pair dividing n_pad that keeps the
    # double-buffered working set under a conservative VMEM budget.
    bytes_per = jnp.dtype(dt).itemsize

    def vmem_bytes(tm, tk):
        n_in = (tm * tk                      # adj tile
                + tk * f_pad                 # x panel
                + tm * f_pad                 # h0 tile
                + len(w_ops) * f_pad * f_pad # resident weight(s)
                + (tm * f_pad if residual else 0))
        n_out = tm * f_pad
        scratch = tm * f_pad * 4             # f32 accumulator
        return 2 * (n_in + n_out) * bytes_per + scratch

    budget = 24 * 1024 * 1024
    tm, tk = 128, 128
    for cand_tm in (128, 256, 512):
        if n_pad % cand_tm:
            continue
        for cand_tk in (128, 256, 512, 1024):
            if n_pad % cand_tk:
                continue
            if vmem_bytes(cand_tm, cand_tk) <= budget and cand_tm * cand_tk > tm * tk:
                tm, tk = cand_tm, cand_tk
    grid = (n_pad // tm, n_pad // tk)

    in_specs = [
        pl.BlockSpec((tm, tk), lambda i, k: (i, k)),        # adj tile
        pl.BlockSpec((tk, f_pad), lambda i, k: (k, 0)),     # x panel (spmm rhs)
        pl.BlockSpec((tm, f_pad), lambda i, k: (i, 0)),     # h0 row tile
    ]
    operands = [adj_p, x_p, h0_p]
    for w in w_ops:
        in_specs.append(pl.BlockSpec((f_pad, f_pad), lambda i, k: (0, 0)))  # W resident
        operands.append(w)
    if residual:
        in_specs.append(pl.BlockSpec((tm, f_pad), lambda i, k: (i, 0)))     # x row tile
        operands.append(x_p)

    # TODO(synk): theta/alpha are baked as compile-time constants; distinct
    # (lamda, alpha, l) combos trigger recompiles (fine for layer-wise use).
    kernel = functools.partial(
        _gcn_fused_kernel,
        alpha=float(alpha), theta=float(theta),
        residual=bool(residual), variant=bool(variant),
    )

    out_p = pl.pallas_call(
        kernel,
        out_shape=jax.ShapeDtypeStruct((n_pad, f_pad), dt),
        grid_spec=pltpu.PrefetchScalarGridSpec(
            num_scalar_prefetch=0,
            grid=grid,
            in_specs=in_specs,
            out_specs=pl.BlockSpec((tm, f_pad), lambda i, k: (i, 0)),
            scratch_shapes=[pltpu.VMEM((tm, f_pad), jnp.float32)],
        ),
        compiler_params=pltpu.CompilerParams(
            dimension_semantics=("parallel", "arbitrary"),
        ),
    )(*operands)

    return out_p[:n, :f_out]


# ----------------------------------------------------------------------------
# Module-equivalent wrapper
# ----------------------------------------------------------------------------
class GraphConvolution:
    """JAX/Pallas equivalent of the PyTorch GraphConvolution module
    (variant and residual flags both supported)."""

    def __init__(self, in_features, out_features, residual=False, variant=False, seed=0):
        self.variant = variant
        self.in_features = 2 * in_features if variant else in_features
        self.out_features = out_features
        self.residual = residual
        # reset_parameters: uniform(-stdv, stdv), stdv = 1/sqrt(out_features)
        stdv = 1.0 / math.sqrt(out_features)
        key = jax.random.PRNGKey(seed)
        self.weight = jax.random.uniform(
            key, (self.in_features, self.out_features),
            minval=-stdv, maxval=stdv, dtype=jnp.float32,
        )

    def __call__(self, x, adj, h0, lamda, alpha, l):
        theta = min(1.0, math.log(lamda / l + 1.0))
        return gcn_forward(
            x, adj, h0, self.weight,
            alpha=alpha, theta=theta,
            residual=self.residual, variant=self.variant,
        )


# ----------------------------------------------------------------------------
# Pure-JAX reference for correctness check
# ----------------------------------------------------------------------------
def reference(x, adj, h0, weight, lamda, alpha, l, residual, variant):
    theta = min(1.0, math.log(lamda / l + 1.0))
    hi = adj @ x
    if variant:
        support = jnp.concatenate([hi, h0], axis=1)
        r = (1.0 - alpha) * hi + alpha * h0
    else:
        support = (1.0 - alpha) * hi + alpha * h0
        r = support
    out = theta * (support @ weight) + (1.0 - theta) * r
    if residual:
        out = out + x
    return out


if __name__ == "__main__":
    N = 64        # number of graph nodes
    F_HID = 32    # hidden feature dim (in_features == out_features, GCNII style)

    key = jax.random.PRNGKey(0)
    kx, kadj, kh0 = jax.random.split(key, 3)

    x = jax.random.normal(kx, (N, F_HID), dtype=jnp.float32)
    h0 = jax.random.normal(kh0, (N, F_HID), dtype=jnp.float32)

    # Symmetric, row-normalized dense adjacency (spmm done densely).
    a = jax.random.uniform(kadj, (N, N), dtype=jnp.float32)
    adj = (a + a.T) * 0.5
    adj = adj / jnp.sum(adj, axis=1, keepdims=True)

    lamda, alpha, l = 0.5, 0.1, 1

    # variant=False, residual=False (skips the extra x DMA stream)
    layer = GraphConvolution(F_HID, F_HID, residual=False, variant=False, seed=0)
    out = jax.block_until_ready(layer(x, adj, h0, lamda, alpha, l))
    ref = reference(x, adj, h0, layer.weight, lamda, alpha, l, False, False)
    assert out.shape == (N, F_HID)
    assert jnp.allclose(out, ref, atol=1e-4, rtol=1e-4), "mismatch (variant=F, residual=F)"

    # variant=False, residual=True
    layer_r = GraphConvolution(F_HID, F_HID, residual=True, variant=False, seed=0)
    out_r = jax.block_until_ready(layer_r(x, adj, h0, lamda, alpha, l))
    ref_r = reference(x, adj, h0, layer_r.weight, lamda, alpha, l, True, False)
    assert jnp.allclose(out_r, ref_r, atol=1e-4, rtol=1e-4), "mismatch (variant=F, residual=T)"

    # variant=True, residual=True (concat path folded into split-weight matmuls)
    layer_v = GraphConvolution(F_HID, F_HID, residual=True, variant=True, seed=0)
    out_v = jax.block_until_ready(layer_v(x, adj, h0, lamda, alpha, l))
    ref_v = reference(x, adj, h0, layer_v.weight, lamda, alpha, l, True, True)
    assert jnp.allclose(out_v, ref_v, atol=1e-4, rtol=1e-4), "mismatch (variant=T, residual=T)"

    print("KERNEL_OK")
</pallas_src>

<mosaic_0001>
module attributes {stable_mosaic.version = 11 : i64} {
  func.func @_gcn_fused_kernel(%arg0: i32, %arg1: i32, %arg2: memref<128x128xf32, #tpu.memory_space<vmem>>, %arg3: memref<128x128xf32, #tpu.memory_space<vmem>>, %arg4: memref<128x128xf32, #tpu.memory_space<vmem>>, %arg5: memref<128x128xf32, #tpu.memory_space<vmem>>, %arg6: memref<128x128xf32, #tpu.memory_space<vmem>>, %arg7: memref<128x128xf32, #tpu.memory_space<vmem>>) attributes {dimension_semantics = [#tpu.dimension_semantics<parallel>, #tpu.dimension_semantics<arbitrary>], iteration_bounds = array<i64: 1, 1>, scalar_prefetch = 0 : i64, scratch_operands = 1 : i64, tpu.core_type = #tpu.core_type<tc>, window_params = [{transform_indices = @transform_0, window_bounds = array<i64: 128, 128>}, {transform_indices = @transform_1, window_bounds = array<i64: 128, 128>}, {transform_indices = @transform_2, window_bounds = array<i64: 128, 128>}, {pipeline_mode = #tpu.pipeline_mode<synchronous>, transform_indices = @transform_3, window_bounds = array<i64: 128, 128>}, {transform_indices = @transform_4, window_bounds = array<i64: 128, 128>}]} {
    %c0_i32 = arith.constant 0 : i32
    %0 = arith.cmpi eq, %arg1, %c0_i32 : i32
    %1 = arith.extui %0 : i1 to i32
    %c0_i32_0 = arith.constant 0 : i32
    %2 = arith.cmpi ne, %1, %c0_i32_0 : i32
    scf.if %2 {
      %cst_10 = arith.constant 0.000000e+00 : f32
      %12 = vector.broadcast %cst_10 : f32 to vector<128x128xf32>
      %c0_11 = arith.constant 0 : index
      %c0_12 = arith.constant 0 : index
      %13 = vector.load %arg7[%c0_11, %c0_12] : memref<128x128xf32, #tpu.memory_space<vmem>>, vector<128x128xf32>
      tpu.vector_store %arg7[%c0_11, %c0_12], %12 {strides = array<i32>} : memref<128x128xf32, #tpu.memory_space<vmem>>, vector<128x128xf32>,
    } else {
    }
    %c0 = arith.constant 0 : index
    %c0_1 = arith.constant 0 : index
    %3 = vector.load %arg7[%c0, %c0_1] : memref<128x128xf32, #tpu.memory_space<vmem>>, vector<128x128xf32>
    %c0_2 = arith.constant 0 : index
    %c0_3 = arith.constant 0 : index
    %4 = vector.load %arg2[%c0_2, %c0_3] : memref<128x128xf32, #tpu.memory_space<vmem>>, vector<128x128xf32>
    %c0_4 = arith.constant 0 : index
    %c0_5 = arith.constant 0 : index
    %5 = vector.load %arg3[%c0_4, %c0_5] : memref<128x128xf32, #tpu.memory_space<vmem>>, vector<128x128xf32>
    %cst = arith.constant dense<0.000000e+00> : vector<128x128xf32>
    %6 = tpu.matmul %4, %5, %cst {dimension_numbers = #tpu.dot_dimension_numbers<[1], [0], [0], [1], [0, 0, 1, 1], [], []>} : vector<128x128xf32>, vector<128x128xf32>, vector<128x128xf32> -> vector<128x128xf32>
    %7 = arith.addf %3, %6 : vector<128x128xf32>
    %c0_6 = arith.constant 0 : index
    %c0_7 = arith.constant 0 : index
    %8 = vector.load %arg7[%c0_6, %c0_7] : memref<128x128xf32, #tpu.memory_space<vmem>>, vector<128x128xf32>
    tpu.vector_store %arg7[%c0_6, %c0_7], %7 {strides = array<i32>} : memref<128x128xf32, #tpu.memory_space<vmem>>, vector<128x128xf32>,
    %c0_i32_8 = arith.constant 0 : i32
    %9 = arith.cmpi eq, %arg1, %c0_i32_8 : i32
    %10 = arith.extui %9 : i1 to i32
    %c0_i32_9 = arith.constant 0 : i32
    %11 = arith.cmpi ne, %10, %c0_i32_9 : i32
    scf.if %11 {
      %c0_10 = arith.constant 0 : index
      %c0_11 = arith.constant 0 : index
      %12 = vector.load %arg7[%c0_10, %c0_11] : memref<128x128xf32, #tpu.memory_space<vmem>>, vector<128x128xf32>
      %c0_12 = arith.constant 0 : index
      %c0_13 = arith.constant 0 : index
      %13 = vector.load %arg4[%c0_12, %c0_13] : memref<128x128xf32, #tpu.memory_space<vmem>>, vector<128x128xf32>
      %cst_14 = arith.constant 0.899999976 : f32
      %14 = vector.broadcast %cst_14 : f32 to vector<128x128xf32>
      %15 = arith.mulf %14, %12 : vector<128x128xf32>
      %cst_15 = arith.constant 1.000000e-01 : f32
      %16 = vector.broadcast %cst_15 : f32 to vector<128x128xf32>
      %17 = arith.mulf %16, %13 : vector<128x128xf32>
      %18 = arith.addf %15, %17 : vector<128x128xf32>
      %c0_16 = arith.constant 0 : index
      %c0_17 = arith.constant 0 : index
      %19 = vector.load %arg5[%c0_16, %c0_17] : memref<128x128xf32, #tpu.memory_space<vmem>>, vector<128x128xf32>
      %cst_18 = arith.constant dense<0.000000e+00> : vector<128x128xf32>
      %20 = tpu.matmul %18, %19, %cst_18 {dimension_numbers = #tpu.dot_dimension_numbers<[1], [0], [0], [1], [0, 0, 1, 1], [], []>} : vector<128x128xf32>, vector<128x128xf32>, vector<128x128xf32> -> vector<128x128xf32>
      %cst_19 = arith.constant 0.405465096 : f32
      %21 = vector.broadcast %cst_19 : f32 to vector<128x128xf32>
      %22 = arith.mulf %21, %20 : vector<128x128xf32>
      %cst_20 = arith.constant 0.594534874 : f32
      %23 = vector.broadcast %cst_20 : f32 to vector<128x128xf32>
      %24 = arith.mulf %23, %18 : vector<128x128xf32>
      %25 = arith.addf %22, %24 : vector<128x128xf32>
      %c0_21 = arith.constant 0 : index
      %c0_22 = arith.constant 0 : index
      %26 = vector.load %arg6[%c0_21, %c0_22] : memref<128x128xf32, #tpu.memory_space<vmem>>, vector<128x128xf32>
      tpu.vector_store %arg6[%c0_21, %c0_22], %25 {strides = array<i32>} : memref<128x128xf32, #tpu.memory_space<vmem>>, vector<128x128xf32>,
    } else {
    }
    return
  }
  func.func @transform_0(%arg0: i32, %arg1: i32) -> (i32, i32) {
    %c0_i32 = arith.constant 0 : i32
    return %arg0, %arg1 : i32, i32
  }
  func.func @transform_1(%arg0: i32, %arg1: i32) -> (i32, i32) {
    %c0_i32 = arith.constant 0 : i32
    %c0_i32_0 = arith.constant 0 : i32
    return %arg1, %c0_i32 : i32, i32
  }
  func.func @transform_2(%arg0: i32, %arg1: i32) -> (i32, i32) {
    %c0_i32 = arith.constant 0 : i32
    %c0_i32_0 = arith.constant 0 : i32
    return %arg0, %c0_i32 : i32, i32
  }
  func.func @transform_3(%arg0: i32, %arg1: i32) -> (i32, i32) {
    %c0_i32 = arith.constant 0 : i32
    %c0_i32_0 = arith.constant 0 : i32
    %c0_i32_1 = arith.constant 0 : i32
    return %c0_i32, %c0_i32_0 : i32, i32
  }
  func.func @transform_4(%arg0: i32, %arg1: i32) -> (i32, i32) {
    %c0_i32 = arith.constant 0 : i32
    %c0_i32_0 = arith.constant 0 : i32
    return %arg0, %c0_i32 : i32, i32
  }
}

</mosaic_0001>

<bundles_post_ra>
// kernel: tpu_custom_call.1
= control target key start
LH: loop header
LB: loop body
LE: loop exit
PB: predicated region body
PF: predicated region fallthrough
CT: control target
= control target key end

     0   :  { %9 = vsyncpa [#allocation4], 0  ;;  %s1195_s0 = inlined_call_operand.hbm [shape: f32[128,128], index: 0, kind: input, shape index: {}]   ;;  %s1196_s1 = inlined_call_operand.hbm [shape: f32[128,128], index: 1, kind: input, shape index: {}]   ;;  %s1197_s2 = inlined_call_operand.hbm [shape: f32[128,128], index: 2, kind: input, shape index: {}]   ;;  %s1198_s3 = inlined_call_operand.hbm [shape: f32[128,128], index: 3, kind: input, shape index: {}]   ;;  %s1199_s4 = inlined_call_operand.hbm [shape: f32[128,128], index: 4, kind: output, shape index: {}]  }
   0x1   :  { %10 = vsyncpa [#allocation7], 0 }
   0x2   :  { %11 = vsyncpa [#allocation10], 0 }
   0x3   :  { %12 = vsyncpa [#allocation5], 0  ;;  %s1010_s15 = smov [#allocation6]   ;;  %s1011_s17 = smov [#allocation3]  }
   0x4   :  { %s30_s16 = sshll.u32 %s1010_s15, 4  ;;  %s18_s18 = sshll.u32 %s1011_s17, 4  ;;  %s31_s16 = int_to_ptr.vmem [resolvable:$true] %s30_s16  ;;  %s1042_s18 = int_to_ptr.vmem [resolvable:$true] %s18_s18 }
   0x5   :  { %s892_s21 = scalar_lea.hbm %s1196_s1, 2048 }
   0x6   :  { %p893_p0 = scmp.ne.s32.totalorder %s1196_s1, %s892_s21  ;;  %p896_p1 = scmp.lt.u32.totalorder %s892_s21, %s1196_s1 }
   0x8   :  { %p898_p2 = pnand %p896_p1, %p893_p0 }
   0xa   :  { %901 = shalt.err (!%p898_p2)
}
   0xb   :  { %s902_s26 = scalar_lea.vmem %s31_s16, 2048  ;;  %p907_p4 = scmp.lt.s32.totalorder %s31_s16, %s31_s16 }
   0xc   :  { %p903_p3 = scmp.ne.s32.totalorder %s31_s16, %s902_s26  ;;  %p908_p5 = scmp.lt.s32.totalorder %s902_s26, %s902_s26 }
   0xe   :  { %p909_p6 = por %p908_p5, %p907_p4 }
  0x10   :  { %p910_p7 = pnand %p909_p6, %p903_p3 }
  0x12   :  { %913 = shalt.err (!%p910_p7)
}
  0x13   :  { %s1012_s27 = smov 128   ;;  %s1013_s28 = smov 8  }
  0x14   :  { %36 = dma.hbm_to_vmem [thread:$0]  %s1196_s1, 2048, %s31_s16, [#allocation7], %s1012_s27, %s1012_s27, %s1013_s28  }
  0x15   :  { %s914_s7 = scalar_lea.hbm %s1195_s0, 2048 }
  0x16   :  { %p915_p8 = scmp.ne.s32.totalorder %s1195_s0, %s914_s7  ;;  %p918_p9 = scmp.lt.u32.totalorder %s914_s7, %s1195_s0 }
  0x18   :  { %p920_p10 = pnand %p918_p9, %p915_p8 }
  0x1a   :  { %923 = shalt.err (!%p920_p10)
}
  0x1b   :  { %s924_s12 = scalar_lea.vmem %s1042_s18, 2048  ;;  %p929_p12 = scmp.lt.s32.totalorder %s1042_s18, %s1042_s18 }
  0x1c   :  { %p925_p11 = scmp.ne.s32.totalorder %s1042_s18, %s924_s12  ;;  %p930_p13 = scmp.lt.s32.totalorder %s924_s12, %s924_s12 }
  0x1e   :  { %p931_p0 = por %p930_p13, %p929_p12 }
  0x20   :  { %p932_p1 = pnand %p931_p0, %p925_p11 }
  0x22   :  { %935 = shalt.err (!%p932_p1)
}
  0x23   :  { %24 = dma.hbm_to_vmem [thread:$0]  %s1195_s0, 2048, %s1042_s18, [#allocation4], %s1012_s27, %s1012_s27, %s1013_s28  }
  0x24   :  { %s1014_s14 = smov [#allocation8]   ;;  %s1015_s16 = smov [#allocation9]  }
  0x25   :  { %s42_s15 = sshll.u32 %s1014_s14, 4  ;;  %s54_s17 = sshll.u32 %s1015_s16, 4  ;;  %s43_s15 = int_to_ptr.vmem [resolvable:$true] %s42_s15  ;;  %s1079_s17 = int_to_ptr.vmem [resolvable:$true] %s54_s17 }
  0x26   :  { %s936_s21 = scalar_lea.hbm %s1197_s2, 2048 }
  0x27   :  { %p937_p2 = scmp.ne.s32.totalorder %s1197_s2, %s936_s21  ;;  %p940_p3 = scmp.lt.u32.totalorder %s936_s21, %s1197_s2 }
  0x29   :  { %p942_p4 = pnand %p940_p3, %p937_p2 }
  0x2b   :  { %945 = shalt.err (!%p942_p4)
}
  0x2c   :  { %s946_s0 = scalar_lea.vmem %s43_s15, 2048  ;;  %p951_p6 = scmp.lt.s32.totalorder %s43_s15, %s43_s15 }
  0x2d   :  { %p947_p5 = scmp.ne.s32.totalorder %s43_s15, %s946_s0  ;;  %p952_p7 = scmp.lt.s32.totalorder %s946_s0, %s946_s0 }
  0x2f   :  { %p953_p8 = por %p952_p7, %p951_p6 }
  0x31   :  { %p954_p9 = pnand %p953_p8, %p947_p5 }
  0x33   :  { %957 = shalt.err (!%p954_p9)
}
  0x34   :  { %48 = dma.hbm_to_vmem [thread:$0]  %s1197_s2, 2048, %s43_s15, [#allocation7], %s1012_s27, %s1012_s27, %s1013_s28  }
  0x35   :  { %s958_s5 = scalar_lea.hbm %s1198_s3, 2048 }
  0x36   :  { %p959_p10 = scmp.ne.s32.totalorder %s1198_s3, %s958_s5  ;;  %p962_p11 = scmp.lt.u32.totalorder %s958_s5, %s1198_s3 }
  0x38   :  { %p964_p12 = pnand %p962_p11, %p959_p10 }
  0x3a   :  { %967 = shalt.err (!%p964_p12)
}
  0x3b   :  { %s968_s10 = scalar_lea.vmem %s1079_s17, 2048  ;;  %p973_p0 = scmp.lt.s32.totalorder %s1079_s17, %s1079_s17 }
  0x3c   :  { %p969_p13 = scmp.ne.s32.totalorder %s1079_s17, %s968_s10  ;;  %p974_p1 = scmp.lt.s32.totalorder %s968_s10, %s968_s10 }
  0x3e   :  { %p975_p2 = por %p974_p1, %p973_p0 }
  0x40   :  { %p976_p3 = pnand %p975_p2, %p969_p13 }
  0x42   :  { %979 = shalt.err (!%p976_p3)
}
  0x43   :  { %60 = dma.hbm_to_vmem [thread:$0]  %s1198_s3, 2048, %s1079_s17, [#allocation10], %s1012_s27, %s1012_s27, %s1013_s28  }
  0x44   :  { %1002 = dma.done.wait [#allocation4], 2048  }
  0x45   :  { %1003 = vsyncadd [#allocation4], 4294965248 }
  0x46   :  { %1004 = dma.done.wait [#allocation7], 4096  }
  0x47   :  { %1005 = vsyncadd [#allocation7], 4294963200 }
  0x48   :  { %1006 = dma.done.wait [#allocation10], 2048  }
  0x49   :  { %1007 = vsyncadd [#allocation10], 4294965248  ;;  %v125_v0 = vld [vmem:[#allocation6] sm:$0xff]  ;;  %v126_v1 = vld [vmem:[#allocation6 + $0x8] sm:$0xff]  ;;  %s1016_s3 = smov [#allocation11]  }
  0x4a   :  { %v127_v2 = vld [vmem:[#allocation6 + $0x10] sm:$0xff]  ;;  %v821_v3 = vpack.c.bf16 %v126_v1, %v125_v0  ;;  %v128_v4 = vld [vmem:[#allocation6 + $0x18] sm:$0xff]  ;;  %v129_v6 = vld [vmem:[#allocation6 + $0x20] sm:$0xff]  ;;  %s631_s12 = sshll.u32 %s1016_s3, 4  ;;  %s632_s12 = int_to_ptr.vmem [resolvable:$true] %s631_s12 }
  0x4b   :  { %v825_v5 = vpack.c.bf16 %v128_v4, %v127_v2  ;;  %v130_v7 = vld [vmem:[#allocation6 + $0x28] sm:$0xff]  ;;  %v109_v9 = vld [vmem:[#allocation3] sm:$0xff]  ;;  %v131_v10 = vld [vmem:[#allocation6 + $0x30] sm:$0xff]  ;;  %s980_s1 = scalar_lea.vmem %s632_s12, 2048  ;;  %p985_p5 = scmp.lt.s32.totalorder %s632_s12, %s632_s12 }
  0x4c   :  { %822 = vmatprep.subr.bf16.mxu0 %v821_v3  ;;  %v829_v8 = vpack.c.bf16 %v130_v7, %v129_v6  ;;  %v132_v11 = vld [vmem:[#allocation6 + $0x38] sm:$0xff]  ;;  %741 = vmatprep.mubr.f32.mxu0 %v109_v9  ;;  %v133_v13 = vld [vmem:[#allocation6 + $0x40] sm:$0xff]  ;;  %v134_v14 = vld [vmem:[#allocation6 + $0x48] sm:$0xff]  ;;  %p981_p4 = scmp.ne.s32.totalorder %s632_s12, %s980_s1  ;;  %p986_p6 = scmp.lt.s32.totalorder %s980_s1, %s980_s1 }
  0x4d   :  { %824 = vmatpush3.bf16.msra.mxu0 %v821_v3  ;;  %v833_v12 = vpack.c.bf16 %v132_v11, %v131_v10  ;;  %v401_v15 = vld [vmem:[#allocation9] sm:$0xff]  ;;  %v402_v16 = vld [vmem:[#allocation9 + $0x8] sm:$0xff]  ;;  %v403_v17 = vld [vmem:[#allocation9 + $0x10] sm:$0xff]  ;;  %v837_v21 = vpack.c.bf16 %v134_v14, %v133_v13 }
  0x4e   :  { %826 = vmatprep.subr.bf16.mxu0 %v825_v5  ;;  %v404_v18 = vld [vmem:[#allocation9 + $0x18] sm:$0xff]  ;;  %v853_v19 = vpack.c.bf16 %v402_v16, %v401_v15  ;;  %v405_v22 = vld [vmem:[#allocation9 + $0x20] sm:$0xff]  ;;  %v406_v23 = vld [vmem:[#allocation9 + $0x28] sm:$0xff]  ;;  %p987_p7 = por %p986_p6, %p985_p5 }
  0x4f   :  { %v857_v20 = vpack.c.bf16 %v404_v18, %v403_v17  ;;  %v135_v24 = vld [vmem:[#allocation6 + $0x50] sm:$0xff]  ;;  %v136_v25 = vld [vmem:[#allocation6 + $0x58] sm:$0xff]  ;;  %v861_v26 = vpack.c.bf16 %v406_v23, %v405_v22  ;;  %v137_v30 = vld [vmem:[#allocation6 + $0x60] sm:$0xff] }
  0x50   :  { %854 = vmatprep.subr.bf16.mxu1 %v853_v19  ;;  %v841_v27 = vpack.c.bf16 %v136_v25, %v135_v24  ;;  %v407_v28 = vld [vmem:[#allocation9 + $0x30] sm:$0xff]  ;;  %v408_v29 = vld [vmem:[#allocation9 + $0x38] sm:$0xff]  ;;  %v138_v31 = vld [vmem:[#allocation6 + $0x68] sm:$0xff]  ;;  %p988_p8 = pnand %p987_p7, %p981_p4 }
  0x51   :  { %828 = vmatpush3.bf16.msra.mxu0 %v825_v5  ;;  %856 = vmatpush3.bf16.msra.mxu1 %v853_v19  ;;  %v865_v32 = vpack.c.bf16 %v408_v29, %v407_v28  ;;  %v845_v33 = vpack.c.bf16 %v138_v31, %v137_v30  ;;  %v409_v34 = vld [vmem:[#allocation9 + $0x40] sm:$0xff]  ;;  %v410_v35 = vld [vmem:[#allocation9 + $0x48] sm:$0xff]  ;;  %v139_v36 = vld [vmem:[#allocation6 + $0x70] sm:$0xff] }
  0x52   :  { %830 = vmatprep.subr.bf16.mxu0 %v829_v8  ;;  %858 = vmatprep.subr.bf16.mxu1 %v857_v20  ;;  %v140_v37 = vld [vmem:[#allocation6 + $0x78] sm:$0xff]  ;;  %v869_v38 = vpack.c.bf16 %v410_v35, %v409_v34  ;;  %v411_v40 = vld [vmem:[#allocation9 + $0x50] sm:$0xff]  ;;  %v413_v43 = vld [vmem:[#allocation9 + $0x60] sm:$0xff] }
  0x53   :  { %v849_v39 = vpack.c.bf16 %v140_v37, %v139_v36  ;;  %v412_v41 = vld [vmem:[#allocation9 + $0x58] sm:$0xff]  ;;  %v414_v44 = vld [vmem:[#allocation9 + $0x68] sm:$0xff]  ;;  %v111_v47 = vld [vmem:[#allocation3 + $0x10] sm:$0xff] }
  0x54   :  { %v873_v42 = vpack.c.bf16 %v412_v41, %v411_v40  ;;  %v110_v45 = vld [vmem:[#allocation3 + $0x8] sm:$0xff]  ;;  %v877_v46 = vpack.c.bf16 %v414_v44, %v413_v43  ;;  %v112_v48 = vld [vmem:[#allocation3 + $0x18] sm:$0xff]  ;;  %v113_v49 = vld [vmem:[#allocation3 + $0x20] sm:$0xff] }
  0x55   :  { %832 = vmatpush3.bf16.msra.mxu0 %v829_v8  ;;  %860 = vmatpush3.bf16.msra.mxu1 %v857_v20  ;;  %v114_v50 = vld [vmem:[#allocation3 + $0x28] sm:$0xff]  ;;  %v115_v51 = vld [vmem:[#allocation3 + $0x30] sm:$0xff]  ;;  %v116_v52 = vld [vmem:[#allocation3 + $0x38] sm:$0xff] }
  0x56   :  { %834 = vmatprep.subr.bf16.mxu0 %v833_v12  ;;  %862 = vmatprep.subr.bf16.mxu1 %v861_v26  ;;  %v117_v53 = vld [vmem:[#allocation3 + $0x40] sm:$0xff]  ;;  %v118_v54 = vld [vmem:[#allocation3 + $0x48] sm:$0xff]  ;;  %v119_v55 = vld [vmem:[#allocation3 + $0x50] sm:$0xff] }
  0x57   :  { %v120_v56 = vld [vmem:[#allocation3 + $0x58] sm:$0xff]  ;;  %v121_v57 = vld [vmem:[#allocation3 + $0x60] sm:$0xff]  ;;  %v122_v58 = vld [vmem:[#allocation3 + $0x68] sm:$0xff] }
  0x58   :  { %v123_v59 = vld [vmem:[#allocation3 + $0x70] sm:$0xff]  ;;  %v124_v60 = vld [vmem:[#allocation3 + $0x78] sm:$0xff]  ;;  %v337_v0 = vld [vmem:[#allocation8] sm:$0xff] }
  0x59   :  { %836 = vmatpush3.bf16.msra.mxu0 %v833_v12  ;;  %864 = vmatpush3.bf16.msra.mxu1 %v861_v26  ;;  %v415_v61 = vld [vmem:[#allocation9 + $0x70] sm:$0xff]  ;;  %v416_v62 = vld [vmem:[#allocation9 + $0x78] sm:$0xff]  ;;  %v338_v1 = vld [vmem:[#allocation8 + $0x8] sm:$0xff]  ;;  %v369_v3 = vmul.f32 0.1, %v337_v0 }
  0x5a   :  { %838 = vmatprep.subr.bf16.mxu0 %v837_v21  ;;  %866 = vmatprep.subr.bf16.mxu1 %v865_v32  ;;  %v881_v63 = vpack.c.bf16 %v416_v62, %v415_v61  ;;  %v370_v5 = vmul.f32 0.1, %v338_v1  ;;  %v339_v7 = vld [vmem:[#allocation8 + $0x10] sm:$0xff]  ;;  %v340_v9 = vld [vmem:[#allocation8 + $0x18] sm:$0xff]  ;;  %v341_v17 = vld [vmem:[#allocation8 + $0x20] sm:$0xff] }
  0x5b   :  { %v371_v11 = vmul.f32 0.1, %v339_v7  ;;  %v372_v15 = vmul.f32 0.1, %v340_v9  ;;  %v342_v19 = vld [vmem:[#allocation8 + $0x28] sm:$0xff]  ;;  %v344_v29 = vld [vmem:[#allocation8 + $0x38] sm:$0xff] }
  0x5c   :  { %v373_v22 = vmul.f32 0.1, %v341_v17  ;;  %v374_v25 = vmul.f32 0.1, %v342_v19  ;;  %v376_v35 = vmul.f32 0.1, %v344_v29 }
  0x5d   :  { %840 = vmatpush3.bf16.msra.mxu0 %v837_v21  ;;  %868 = vmatpush3.bf16.msra.mxu1 %v865_v32  ;;  %v345_v37 = vld [vmem:[#allocation8 + $0x40] sm:$0xff] }
  0x5e   :  { %842 = vmatprep.subr.bf16.mxu0 %v841_v27  ;;  %870 = vmatprep.subr.bf16.mxu1 %v869_v38 }
  0x61   :  { %844 = vmatpush3.bf16.msra.mxu0 %v841_v27  ;;  %872 = vmatpush3.bf16.msra.mxu1 %v869_v38  ;;  %v343_v27 = vld [vmem:[#allocation8 + $0x30] sm:$0xff] }
  0x62   :  { %846 = vmatprep.subr.bf16.mxu0 %v845_v33  ;;  %874 = vmatprep.subr.bf16.mxu1 %v873_v42  ;;  %v375_v32 = vmul.f32 0.1, %v343_v27 }
  0x65   :  { %848 = vmatpush3.bf16.msra.mxu0 %v845_v33  ;;  %876 = vmatpush3.bf16.msra.mxu1 %v873_v42  ;;  %v377_v42 = vmul.f32 0.1, %v345_v37 }
  0x66   :  { %850 = vmatprep.subr.bf16.mxu0 %v849_v39  ;;  %878 = vmatprep.subr.bf16.mxu1 %v877_v46 }
  0x69   :  { %852 = vmatpush3.bf16.msra.mxu0 %v849_v39  ;;  %880 = vmatpush3.bf16.msra.mxu1 %v877_v46  ;;  %v346_v39 = vld [vmem:[#allocation8 + $0x48] sm:$0xff] }
  0x6a   :  { %882 = vmatprep.subr.bf16.mxu1 %v881_v63 }
  0x6c   :  { %742 = vmatmul.mubr.f32.vlgmr.msra.gmra.mrb[0].mxu0 %v110_v45  ;;  %v378_v45 = vmul.f32 0.1, %v346_v39 }
  0x6d   :  { %744 = vmatprep.mubr.f32.mxu0 %v111_v47  ;;  %884 = vmatpush3.bf16.msra.mxu1 %v881_v63  ;;  %v347_v47 = vld [vmem:[#allocation8 + $0x50] sm:$0xff] }
  0x70   :  { %745 = vmatmul.mubr.f32.gmra.mrb[2].mxu0 %v112_v48 }
  0x71   :  { %747 = vmatprep.mubr.f32.mxu0 %v113_v49  ;;  %v348_v49 = vld [vmem:[#allocation8 + $0x58] sm:$0xff] }
  0x74   :  { %748 = vmatmul.mubr.f32.gmra.mrb[4].mxu0 %v114_v50 }
  0x75   :  { %750 = vmatprep.mubr.f32.mxu0 %v115_v51 }
  0x78   :  { %751 = vmatmul.mubr.f32.gmra.mrb[6].mxu0 %v116_v52  ;;  %v379_v52 = vmul.f32 0.1, %v347_v47 }
  0x79   :  { %753 = vmatprep.mubr.f32.mxu0 %v117_v53 }
  0x7c   :  { %754 = vmatmul.mubr.f32.gmra.mrb[8].mxu0 %v118_v54 }
  0x7d   :  { %756 = vmatprep.mubr.f32.mxu0 %v119_v55  ;;  %v380_v55 = vmul.f32 0.1, %v348_v49 }
  0x80   :  { %757 = vmatmul.mubr.f32.gmra.mrb[10].mxu0 %v120_v56 }
  0x81   :  { %759 = vmatprep.mubr.f32.mxu0 %v121_v57  ;;  %v349_v57 = vld [vmem:[#allocation8 + $0x60] sm:$0xff] }
  0x82   :  { %v381_v62 = vmul.f32 0.1, %v349_v57 }
  0x84   :  { %760 = vmatmul.mubr.f32.gmra.mrb[12].mxu0 %v122_v58 }
  0x85   :  { %762 = vmatprep.mubr.f32.mxu0 %v123_v59  ;;  %v350_v59 = vld [vmem:[#allocation8 + $0x68] sm:$0xff] }
  0x86   :  { %v382_v1 = vmul.f32 0.1, %v350_v59 }
  0x88   :  { %763 = vmatmul.mubr.f32.gmra.mrb[14].mxu0 %v124_v60 }
 0x13f   :  { %v743_v2 = vpop.f32.mrb[0].mxu0 }
 0x140   :  { %v354_v4 = vmul.f32 0.9, %v743_v2  ;;  %v207_v6 = vpop.f32.mrb[1].mxu0 }
 0x141   :  { %v353_v8 = vmul.f32 0.9, %v207_v6 }
 0x142   :  { %v1118_v13 = vadd.f32 %v370_v5, %v354_v4  ;;  %v352_v5 = vld [vmem:[#allocation8 + $0x78] sm:$0xff] }
 0x143   :  { %v746_v10 = vpop.f32.mrb[2].mxu0  ;;  %v1116_v12 = vadd.f32 %v369_v3, %v353_v8  ;;  %v351_v3 = vld [vmem:[#allocation8 + $0x70] sm:$0xff] }
 0x144   :  { %v356_v14 = vmul.f32 0.9, %v746_v10  ;;  %v217_v16 = vpop.f32.mrb[3].mxu0  ;;  %v383_v8 = vmul.f32 0.1, %v351_v3 }
 0x145   :  { %v355_v18 = vmul.f32 0.9, %v217_v16  ;;  %797 = vmatprep.mubr.f32.mxu1 %v1116_v12 }
 0x146   :  { %798 = vmatmul.mubr.f32.vlgmr.msra.gmra.mrb[0].mxu1 %v1118_v13  ;;  %v1124_v23 = vadd.f32 %v372_v15, %v356_v14 }
 0x147   :  { %v1122_v20 = vadd.f32 %v371_v11, %v355_v18  ;;  %v749_v21 = vpop.f32.mrb[4].mxu0  ;;  %v384_v11 = vmul.f32 0.1, %v352_v5 }
 0x148   :  { %v358_v24 = vmul.f32 0.9, %v749_v21  ;;  %v227_v26 = vpop.f32.mrb[5].mxu0  ;;  %v579_v21 = vmul.f32 0.5945349, %v1118_v13 }
 0x149   :  { %v357_v28 = vmul.f32 0.9, %v227_v26  ;;  %800 = vmatprep.mubr.f32.mxu1 %v1122_v20 }
 0x14a   :  { %801 = vmatmul.mubr.f32.gmra.mrb[2].mxu1 %v1124_v23  ;;  %v1130_v33 = vadd.f32 %v374_v25, %v358_v24  ;;  %v578_v24 = vmul.f32 0.5945349, %v1116_v12 }
 0x14b   :  { %v1128_v30 = vadd.f32 %v373_v22, %v357_v28  ;;  %v752_v31 = vpop.f32.mrb[6].mxu0 }
 0x14c   :  { %v360_v34 = vmul.f32 0.9, %v752_v31  ;;  %v237_v36 = vpop.f32.mrb[7].mxu0  ;;  %v581_v31 = vmul.f32 0.5945349, %v1124_v23 }
 0x14d   :  { %v359_v38 = vmul.f32 0.9, %v237_v36  ;;  %803 = vmatprep.mubr.f32.mxu1 %v1128_v30  ;;  %v583_v12 = vmul.f32 0.5945349, %v1130_v33 }
 0x14e   :  { %804 = vmatmul.mubr.f32.gmra.mrb[4].mxu1 %v1130_v33  ;;  %v1136_v43 = vadd.f32 %v376_v35, %v360_v34  ;;  %v580_v35 = vmul.f32 0.5945349, %v1122_v20 }
 0x14f   :  { %v1134_v40 = vadd.f32 %v375_v32, %v359_v38  ;;  %v755_v41 = vpop.f32.mrb[8].mxu0 }
 0x150   :  { %v362_v44 = vmul.f32 0.9, %v755_v41  ;;  %v247_v46 = vpop.f32.mrb[9].mxu0  ;;  %v585_v47 = vmul.f32 0.5945349, %v1136_v43 }
 0x151   :  { %v361_v48 = vmul.f32 0.9, %v247_v46  ;;  %806 = vmatprep.mubr.f32.mxu1 %v1134_v40  ;;  %v584_v49 = vmul.f32 0.5945349, %v1134_v40 }
 0x152   :  { %807 = vmatmul.mubr.f32.gmra.mrb[6].mxu1 %v1136_v43  ;;  %v1142_v53 = vadd.f32 %v378_v45, %v362_v44 }
 0x153   :  { %v1140_v50 = vadd.f32 %v377_v42, %v361_v48  ;;  %v758_v51 = vpop.f32.mrb[10].mxu0  ;;  %v582_v42 = vmul.f32 0.5945349, %v1128_v30 }
 0x154   :  { %v364_v54 = vmul.f32 0.9, %v758_v51  ;;  %v257_v56 = vpop.f32.mrb[11].mxu0 }
 0x155   :  { %v363_v58 = vmul.f32 0.9, %v257_v56  ;;  %809 = vmatprep.mubr.f32.mxu1 %v1140_v50  ;;  %v586_v57 = vmul.f32 0.5945349, %v1140_v50 }
 0x156   :  { %810 = vmatmul.mubr.f32.gmra.mrb[8].mxu1 %v1142_v53  ;;  %v1148_v63 = vadd.f32 %v380_v55, %v364_v54  ;;  %v587_v55 = vmul.f32 0.5945349, %v1142_v53 }
 0x157   :  { %v1146_v60 = vadd.f32 %v379_v52, %v363_v58  ;;  %v761_v61 = vpop.f32.mrb[12].mxu0 }
 0x158   :  { %v366_v0 = vmul.f32 0.9, %v761_v61  ;;  %v267_v2 = vpop.f32.mrb[13].mxu0 }
 0x159   :  { %v365_v4 = vmul.f32 0.9, %v267_v2  ;;  %812 = vmatprep.mubr.f32.mxu1 %v1146_v60 }
 0x15a   :  { %813 = vmatmul.mubr.f32.gmra.mrb[10].mxu1 %v1148_v63  ;;  %v1154_v9 = vadd.f32 %v382_v1, %v366_v0  ;;  %v588_v1 = vmul.f32 0.5945349, %v1146_v60 }
 0x15b   :  { %v1152_v6 = vadd.f32 %v381_v62, %v365_v4  ;;  %v764_v7 = vpop.f32.mrb[14].mxu0  ;;  %v589_v62 = vmul.f32 0.5945349, %v1148_v63 }
 0x15c   :  { %v368_v10 = vmul.f32 0.9, %v764_v7  ;;  %v277_v14 = vpop.f32.mrb[15].mxu0  ;;  %v591_v5 = vmul.f32 0.5945349, %v1154_v9 }
 0x15d   :  { %v367_v15 = vmul.f32 0.9, %v277_v14  ;;  %815 = vmatprep.mubr.f32.mxu1 %v1152_v6 }
 0x15e   :  { %816 = vmatmul.mubr.f32.gmra.mrb[12].mxu1 %v1154_v9  ;;  %v1160_v17 = vadd.f32 %v384_v11, %v368_v10 }
 0x15f   :  { %v1158_v16 = vadd.f32 %v383_v8, %v367_v15  ;;  %v590_v8 = vmul.f32 0.5945349, %v1152_v6 }
 0x160   :  { %v593_v15 = vmul.f32 0.5945349, %v1160_v17 }
 0x161   :  { %818 = vmatprep.mubr.f32.mxu1 %v1158_v16 }
 0x162   :  { %819 = vmatmul.mubr.f32.gmra.mrb[14].mxu1 %v1160_v17 }
 0x219   :  { %v799_v18 = vpop.f32.mrb[0].mxu1 }
 0x21a   :  { %v563_v19 = vmul.f32 0.4054651, %v799_v18  ;;  %v483_v22 = vpop.f32.mrb[1].mxu1 }
 0x21b   :  { %v562_v25 = vmul.f32 0.4054651, %v483_v22 }
 0x21c   :  { %v595_v26 = vadd.f32 %v579_v21, %v563_v19  ;;  %v592_v19 = vmul.f32 0.5945349, %v1158_v16 }
 0x21d   :  { %v594_v27 = vadd.f32 %v578_v24, %v562_v25  ;;  %v802_v28 = vpop.f32.mrb[2].mxu1 }
 0x21e   :  { %611 = vst [vmem:[#allocation11 + $0x8] sm:$0xff] %v595_v26  ;;  %v565_v29 = vmul.f32 0.4054651, %v802_v28  ;;  %v493_v32 = vpop.f32.mrb[3].mxu1 }
 0x21f   :  { %610 = vst [vmem:[#allocation11] sm:$0xff] %v594_v27  ;;  %v564_v34 = vmul.f32 0.4054651, %v493_v32 }
 0x220   :  { %v597_v36 = vadd.f32 %v581_v31, %v565_v29 }
 0x221   :  { %v596_v37 = vadd.f32 %v580_v35, %v564_v34  ;;  %v805_v38 = vpop.f32.mrb[4].mxu1 }
 0x222   :  { %613 = vst [vmem:[#allocation11 + $0x18] sm:$0xff] %v597_v36  ;;  %v567_v13 = vmul.f32 0.4054651, %v805_v38  ;;  %v503_v39 = vpop.f32.mrb[5].mxu1 }
 0x223   :  { %612 = vst [vmem:[#allocation11 + $0x10] sm:$0xff] %v596_v37  ;;  %v566_v41 = vmul.f32 0.4054651, %v503_v39 }
 0x224   :  { %v599_v44 = vadd.f32 %v583_v12, %v567_v13 }
 0x225   :  { %v598_v45 = vadd.f32 %v582_v42, %v566_v41  ;;  %v808_v23 = vpop.f32.mrb[6].mxu1 }
 0x226   :  { %615 = vst [vmem:[#allocation11 + $0x28] sm:$0xff] %v599_v44  ;;  %v569_v46 = vmul.f32 0.4054651, %v808_v23  ;;  %v513_v20 = vpop.f32.mrb[7].mxu1 }
 0x227   :  { %614 = vst [vmem:[#allocation11 + $0x20] sm:$0xff] %v598_v45  ;;  %v568_v48 = vmul.f32 0.4054651, %v513_v20 }
 0x228   :  { %v601_v51 = vadd.f32 %v585_v47, %v569_v46 }
 0x229   :  { %v600_v52 = vadd.f32 %v584_v49, %v568_v48  ;;  %v811_v33 = vpop.f32.mrb[8].mxu1 }
 0x22a   :  { %617 = vst [vmem:[#allocation11 + $0x38] sm:$0xff] %v601_v51  ;;  %v571_v54 = vmul.f32 0.4054651, %v811_v33  ;;  %v523_v30 = vpop.f32.mrb[9].mxu1 }
 0x22b   :  { %616 = vst [vmem:[#allocation11 + $0x30] sm:$0xff] %v600_v52  ;;  %v570_v56 = vmul.f32 0.4054651, %v523_v30 }
 0x22c   :  { %v603_v58 = vadd.f32 %v587_v55, %v571_v54 }
 0x22d   :  { %v602_v59 = vadd.f32 %v586_v57, %v570_v56  ;;  %v814_v43 = vpop.f32.mrb[10].mxu1 }
 0x22e   :  { %619 = vst [vmem:[#allocation11 + $0x48] sm:$0xff] %v603_v58  ;;  %v573_v61 = vmul.f32 0.4054651, %v814_v43  ;;  %v533_v40 = vpop.f32.mrb[11].mxu1 }
 0x22f   :  { %618 = vst [vmem:[#allocation11 + $0x40] sm:$0xff] %v602_v59  ;;  %v572_v0 = vmul.f32 0.4054651, %v533_v40 }
 0x230   :  { %v605_v2 = vadd.f32 %v589_v62, %v573_v61 }
 0x231   :  { %v604_v3 = vadd.f32 %v588_v1, %v572_v0  ;;  %v817_v53 = vpop.f32.mrb[12].mxu1 }
 0x232   :  { %621 = vst [vmem:[#allocation11 + $0x58] sm:$0xff] %v605_v2  ;;  %v575_v4 = vmul.f32 0.4054651, %v817_v53  ;;  %v543_v50 = vpop.f32.mrb[13].mxu1 }
 0x233   :  { %620 = vst [vmem:[#allocation11 + $0x50] sm:$0xff] %v604_v3  ;;  %v574_v7 = vmul.f32 0.4054651, %v543_v50 }
 0x234   :  { %v607_v10 = vadd.f32 %v591_v5, %v575_v4 }
 0x235   :  { %v606_v11 = vadd.f32 %v590_v8, %v574_v7  ;;  %v820_v63 = vpop.f32.mrb[14].mxu1 }
 0x236   :  { %623 = vst [vmem:[#allocation11 + $0x68] sm:$0xff] %v607_v10  ;;  %v577_v14 = vmul.f32 0.4054651, %v820_v63  ;;  %v553_v60 = vpop.f32.mrb[15].mxu1 }
 0x237   :  { %622 = vst [vmem:[#allocation11 + $0x60] sm:$0xff] %v606_v11  ;;  %v576_v18 = vmul.f32 0.4054651, %v553_v60 }
 0x238   :  { %v609_v9 = vadd.f32 %v593_v15, %v577_v14 }
 0x239   :  { %v608_v21 = vadd.f32 %v592_v19, %v576_v18 }
 0x23a   :  { %625 = vst [vmem:[#allocation11 + $0x78] sm:$0xff] %v609_v9 }
 0x23b   :  { %624 = vst [vmem:[#allocation11 + $0x70] sm:$0xff] %v608_v21 }
 0x23c   :  { %991 = shalt.err (!%p988_p8)
}
 0x23d   :  { %s992_s15 = scalar_lea.hbm %s1199_s4, 2048 }
 0x23e   :  { %p993_p9 = scmp.ne.s32.totalorder %s1199_s4, %s992_s15  ;;  %p996_p10 = scmp.lt.u32.totalorder %s992_s15, %s1199_s4 }
 0x240   :  { %p998_p11 = pnand %p996_p10, %p993_p9 }
 0x242   :  { %1001 = shalt.err (!%p998_p11)
}
 0x243   :  { %637 = dma.vmem_to_hbm [thread:$0]  %s632_s12, 2048, %s1199_s4, [#allocation5], %s1012_s27, %s1012_s27, %s1013_s28  }
 0x244   :  { %1008 = dma.done.wait [#allocation5], 2048  }
 0x245   :  { %1009 = vsyncadd [#allocation5], 4294965248 }
 0x246   :  { %641 = vsyncpa [#allocation4], 1 }
 0x247   :  { %642 = vsyncpa [#allocation7], 1 }
 0x248   :  { %643 = vsyncpa [#allocation10], 1 }
 0x249   :  { %644 = vsyncpa [#allocation5], 1 }

</bundles_post_ra>
